<compile_context>
chip_gen: v7x
topology: tpu7x:2x2x1
jax: 0.10.0
libtpu: 0.0.40
codegen_flags: <defaults>
</compile_context>

<pallas_src>
import jax
import jax.numpy as jnp
from jax.experimental import pallas as pl
from jax.experimental.pallas import tpu as pltpu


# --------------------------------------------------------------------------
# Kernel
# --------------------------------------------------------------------------
def _feature_conv_kernel(x_ref, w_ref, b_ref, o_ref):
    # x_ref : (Nb, C_in, tp)  point tile, points on the lane axis
    # w_ref : (C_out, C_in)   BN-folded conv weight (resident, single-buffered)
    # b_ref : (C_out, 1)      BN-folded bias (broadcast over points)
    # o_ref : (Nb, C_out, tp)
    w = w_ref[...]
    b = b_ref[...]
    for n in range(x_ref.shape[0]):            # static unroll, Nb <= 8
        y = jnp.dot(w, x_ref[n],
                    preferred_element_type=jnp.float32,
                    precision=jax.lax.Precision.HIGHEST)
        o_ref[n] = jnp.maximum(y + b, 0.0).astype(o_ref.dtype)


# --------------------------------------------------------------------------
# Tiling / VMEM-budget derivation
# --------------------------------------------------------------------------
def _largest_divisor_leq(n, cap):
    cap = max(1, min(n, cap))
    for d in range(cap, 0, -1):
        if n % d == 0:
            return d
    return 1


def _vmem_capacity_bytes():
    try:
        return int(pltpu.get_tpu_info().vmem_capacity_bytes)
    except Exception:
        return 64 << 20          # conservative fallback (v7x: 64 MiB per TC)


def _derive_tiling(N, C_in, C_out, P, x_bytes, out_bytes):
    """Pick (Nb, tp, P_pad, vmem_limit) from a generation-aware VMEM budget."""
    lane = 128
    p128 = -(-P // lane) * lane

    vmem_cap = _vmem_capacity_bytes()
    # ~1/3 of physical VMEM for our double-buffered blocks; the rest is
    # headroom for Mosaic internal scratch, the resident weight, etc.
    budget = max(vmem_cap // 3, 8 << 20)
    const_bytes = C_out * C_in * 4 + C_out * 4                  # resident W + bias
    per_point_row = 2 * (C_in * x_bytes + C_out * out_bytes)    # dbl-buffered x+out
    avail = max(budget - const_bytes, per_point_row * lane)

    tp_max = max(lane, (avail // per_point_row) // lane * lane)

    if tp_max >= p128:
        # Whole (padded) point axis fits in one tile; batch rows per step.
        tp = p128
        rows_fit = max(1, int(avail // (per_point_row * tp)))
        nb = _largest_divisor_leq(N, min(rows_fit, 8))
    else:
        tp = min(tp_max, p128)
        nb = 1

    p_pad = -(-P // tp) * tp

    # Keep >= 2 grid steps when possible so both v7x TensorCores get work.
    steps = (N // nb) * (p_pad // tp)
    if steps < 2:
        if N >= 2 and nb > 1:
            nb = _largest_divisor_leq(N, max(1, N // 2))
        elif p_pad > lane:
            tp = max(lane, (p_pad // 2) // lane * lane)
            p_pad = -(-P // tp) * tp

    need = 2 * nb * tp * (C_in * x_bytes + C_out * out_bytes) + const_bytes
    vmem_limit = int(min(vmem_cap * 3 // 4, max(need + (4 << 20), 16 << 20)))
    return nb, tp, p_pad, vmem_limit


# --------------------------------------------------------------------------
# Wrapper
# --------------------------------------------------------------------------
def feature_conv(x, params, *, out_dtype=None):
    """x: (N, C_in, P) in NCL layout (matches PyTorch Conv1d input)."""
    N, C_in, P = x.shape
    out_dtype = x.dtype if out_dtype is None else jnp.dtype(out_dtype)
    eps = 1e-5

    # Fold eval-mode BatchNorm1d(in_chn) and BatchNorm1d(out_chn) into the
    # Conv1d(kernel_size=1) weight + bias (one-time O(C_in*C_out) cost).
    s1 = params["bn1_gamma"] * jax.lax.rsqrt(params["bn1_var"] + eps)
    b1 = params["bn1_beta"] - params["bn1_mean"] * s1
    s2 = params["bn2_gamma"] * jax.lax.rsqrt(params["bn2_var"] + eps)
    b2 = params["bn2_beta"] - params["bn2_mean"] * s2

    W = params["conv_w"][:, :, 0]                          # (C_out, C_in)
    W_fold = (W * s1[None, :]) * s2[:, None]               # diag(s2) @ W @ diag(s1)
    bias = (s2 * (W @ b1) + b2).reshape(-1, 1)             # (C_out, 1)
    C_out = W.shape[0]

    x_bytes = jnp.dtype(x.dtype).itemsize
    o_bytes = jnp.dtype(out_dtype).itemsize
    Nb, tp, P_pad, vmem_limit = _derive_tiling(N, C_in, C_out, P, x_bytes, o_bytes)

    x_in = x if P_pad == P else jnp.pad(x, ((0, 0), (0, 0), (0, P_pad - P)))

    cost = pl.CostEstimate(
        flops=2 * N * C_out * C_in * P_pad,
        transcendentals=0,
        bytes_accessed=N * P_pad * (C_in * x_bytes + C_out * o_bytes)
                       + C_out * C_in * 4 + C_out * 4,
    )

    out = pl.pallas_call(
        _feature_conv_kernel,
        out_shape=jax.ShapeDtypeStruct((N, C_out, P_pad), out_dtype),
        grid_spec=pltpu.PrefetchScalarGridSpec(
            num_scalar_prefetch=0,
            grid=(N // Nb, P_pad // tp),
            in_specs=[
                pl.BlockSpec((Nb, C_in, tp), lambda n, p: (n, 0, p)),      # x tile
                pl.BlockSpec((C_out, C_in), lambda n, p: (0, 0),
                             pipeline_mode=pl.Buffered(1)),                # folded W
                pl.BlockSpec((C_out, 1), lambda n, p: (0, 0),
                             pipeline_mode=pl.Buffered(1)),                # folded bias
            ],
            out_specs=pl.BlockSpec((Nb, C_out, tp), lambda n, p: (n, 0, p)),
        ),
        compiler_params=pltpu.CompilerParams(
            dimension_semantics=("parallel", "parallel"),
            vmem_limit_bytes=vmem_limit,
        ),
        cost_estimate=cost,
    )(x_in, W_fold.astype(jnp.float32), bias.astype(jnp.float32))

    return out if P_pad == P else out[:, :, :P]


# --------------------------------------------------------------------------
# Params / reference
# --------------------------------------------------------------------------
def make_params(key, in_chn, out_chn):
    ks = jax.random.split(key, 7)
    return {
        # BatchNorm1d(in_chn) — eval-mode params (synthetic running stats)
        "bn1_gamma": jax.random.uniform(ks[0], (in_chn,), jnp.float32, 0.5, 1.5),
        "bn1_beta": jax.random.normal(ks[1], (in_chn,), jnp.float32) * 0.1,
        "bn1_mean": jax.random.normal(ks[2], (in_chn,), jnp.float32) * 0.1,
        "bn1_var": jax.random.uniform(ks[3], (in_chn,), jnp.float32, 0.5, 1.5),
        # Conv1d(in_chn, out_chn, kernel_size=1, bias=False)
        "conv_w": jax.random.normal(ks[4], (out_chn, in_chn, 1), jnp.float32)
                  * (1.0 / jnp.sqrt(in_chn)),
        # BatchNorm1d(out_chn)
        "bn2_gamma": jax.random.uniform(ks[5], (out_chn,), jnp.float32, 0.5, 1.5),
        "bn2_beta": jax.random.normal(ks[6], (out_chn,), jnp.float32) * 0.1,
        "bn2_mean": jnp.zeros((out_chn,), jnp.float32),
        "bn2_var": jnp.ones((out_chn,), jnp.float32),
    }
    # TODO(synk): training-mode BatchNorm (batch statistics) is not modeled;
    # this reproduces module.eval() semantics with synthetic running stats.


def _reference(x, params):
    eps = 1e-5
    s1 = params["bn1_gamma"] / jnp.sqrt(params["bn1_var"] + eps)
    b1 = params["bn1_beta"] - params["bn1_mean"] * s1
    xb = x * s1[None, :, None] + b1[None, :, None]
    y = jnp.einsum("oc,ncp->nop", params["conv_w"][:, :, 0], xb)
    s2 = params["bn2_gamma"] / jnp.sqrt(params["bn2_var"] + eps)
    b2 = params["bn2_beta"] - params["bn2_mean"] * s2
    y = y * s2[None, :, None] + b2[None, :, None]
    return jnp.maximum(y, 0.0)


if __name__ == "__main__":
    key = jax.random.PRNGKey(0)
    k_x, k_p = jax.random.split(key)

    batch, in_chn, out_chn, n_points = 2, 4, 32, 16
    x = jax.random.normal(k_x, (batch, in_chn, n_points), jnp.float32)
    params = make_params(k_p, in_chn, out_chn)

    ref = _reference(x, params)

    # Default (f32 output) — matches PyTorch eval-mode numerics.
    out = jax.block_until_ready(feature_conv(x, params))
    assert out.shape == (batch, out_chn, n_points)
    assert jnp.allclose(out, ref, atol=1e-4, rtol=1e-4), "f32 mismatch vs reference"

    # bf16 output path (halves the dominant HBM write stream; f32 MXU accum).
    out_bf16 = jax.block_until_ready(feature_conv(x, params, out_dtype=jnp.bfloat16))
    assert out_bf16.shape == (batch, out_chn, n_points)
    assert jnp.allclose(out_bf16.astype(jnp.float32), ref, atol=5e-2, rtol=5e-2), \
        "bf16 mismatch vs reference"

    print("KERNEL_OK")
</pallas_src>

<mosaic_0001>
module attributes {stable_mosaic.version = 11 : i64} {
  func.func @_feature_conv_kernel(%arg0: i32, %arg1: i32, %arg2: memref<1x4x128xf32, #tpu.memory_space<vmem>>, %arg3: memref<32x4xf32, #tpu.memory_space<vmem>>, %arg4: memref<32x1xf32, #tpu.memory_space<vmem>>, %arg5: memref<1x32x128xf32, #tpu.memory_space<vmem>>) attributes {dimension_semantics = [#tpu.dimension_semantics<parallel>, #tpu.dimension_semantics<parallel>], iteration_bounds = array<i64: 2, 1>, scalar_prefetch = 0 : i64, scratch_operands = 0 : i64, tpu.core_type = #tpu.core_type<tc>, window_params = [{transform_indices = @transform_0, window_bounds = array<i64: 1, 4, 128>}, {pipeline_mode = #tpu.pipeline_mode<synchronous>, transform_indices = @transform_1, window_bounds = array<i64: 32, 4>}, {pipeline_mode = #tpu.pipeline_mode<synchronous>, transform_indices = @transform_2, window_bounds = array<i64: 32, 1>}, {transform_indices = @transform_3, window_bounds = array<i64: 1, 32, 128>}]} {
    %c0 = arith.constant 0 : index
    %c0_0 = arith.constant 0 : index
    %0 = vector.load %arg3[%c0, %c0_0] : memref<32x4xf32, #tpu.memory_space<vmem>>, vector<32x4xf32>
    %c0_1 = arith.constant 0 : index
    %c0_2 = arith.constant 0 : index
    %1 = vector.load %arg4[%c0_1, %c0_2] : memref<32x1xf32, #tpu.memory_space<vmem>>, vector<32x1xf32>
    %c0_3 = arith.constant 0 : index
    %c0_4 = arith.constant 0 : index
    %c0_5 = arith.constant 0 : index
    %2 = vector.load %arg2[%c0_3, %c0_4, %c0_5] : memref<1x4x128xf32, #tpu.memory_space<vmem>>, vector<1x4x128xf32>
    %3 = vector.shape_cast %2 : vector<1x4x128xf32> to vector<4x128xf32>
    %cst = arith.constant dense<0.000000e+00> : vector<32x128xf32>
    %4 = tpu.matmul %0, %3, %cst {dimension_numbers = #tpu.dot_dimension_numbers<[1], [0], [0], [1], [0, 0, 1, 1], [], []>, precision = #tpu.contract_precision<fp32>} : vector<32x4xf32>, vector<4x128xf32>, vector<32x128xf32> -> vector<32x128xf32>
    %5 = vector.broadcast %1 : vector<32x1xf32> to vector<32x128xf32>
    %6 = arith.addf %4, %5 : vector<32x128xf32>
    %cst_6 = arith.constant 0.000000e+00 : f32
    %7 = vector.broadcast %cst_6 : f32 to vector<32x128xf32>
    %8 = arith.maximumf %6, %7 : vector<32x128xf32>
    %c0_7 = arith.constant 0 : index
    %c0_8 = arith.constant 0 : index
    %c0_9 = arith.constant 0 : index
    %9 = vector.load %arg5[%c0_7, %c0_8, %c0_9] : memref<1x32x128xf32, #tpu.memory_space<vmem>>, vector<1x32x128xf32>
    %10 = vector.shape_cast %9 : vector<1x32x128xf32> to vector<32x128xf32>
    %11 = vector.shape_cast %8 : vector<32x128xf32> to vector<1x32x128xf32>
    tpu.vector_store %arg5[%c0_7, %c0_8, %c0_9], %11 {strides = array<i32>} : memref<1x32x128xf32, #tpu.memory_space<vmem>>, vector<1x32x128xf32>,
    return
  }
  func.func @transform_0(%arg0: i32, %arg1: i32) -> (i32, i32, i32) {
    %c0_i32 = arith.constant 0 : i32
    %c0_i32_0 = arith.constant 0 : i32
    return %arg0, %c0_i32, %arg1 : i32, i32, i32
  }
  func.func @transform_1(%arg0: i32, %arg1: i32) -> (i32, i32) {
    %c0_i32 = arith.constant 0 : i32
    %c0_i32_0 = arith.constant 0 : i32
    %c0_i32_1 = arith.constant 0 : i32
    return %c0_i32, %c0_i32_0 : i32, i32
  }
  func.func @transform_2(%arg0: i32, %arg1: i32) -> (i32, i32) {
    %c0_i32 = arith.constant 0 : i32
    %c0_i32_0 = arith.constant 0 : i32
    %c0_i32_1 = arith.constant 0 : i32
    return %c0_i32, %c0_i32_0 : i32, i32
  }
  func.func @transform_3(%arg0: i32, %arg1: i32) -> (i32, i32, i32) {
    %c0_i32 = arith.constant 0 : i32
    %c0_i32_0 = arith.constant 0 : i32
    return %arg0, %c0_i32, %arg1 : i32, i32, i32
  }
}

</mosaic_0001>

<bundles_post_ra>
// kernel: tpu_custom_call.1
= control target key start
LH: loop header
LB: loop body
LE: loop exit
PB: predicated region body
PF: predicated region fallthrough
CT: control target
= control target key end

     0   :  { %8 = vsyncpa [#allocation3], 0  ;;  %s1356_s0 = inlined_call_operand.vmem [shape: f32[2,4,128], index: 0, kind: input, shape index: {}]   ;;  %s1357_s1 = inlined_call_operand.vmem [shape: f32[32,4], index: 1, kind: input, shape index: {}]   ;;  %s1358_s2 = inlined_call_operand.vmem [shape: f32[32,1], index: 2, kind: input, shape index: {}]   ;;  %s1359_s3 = inlined_call_operand.hbm [shape: f32[2,32,128], index: 3, kind: output, shape index: {}]  }
   0x1   :  { %10 = vsyncpa [#allocation3 + $0x1], 0  ;;  %s1189_s12 = smov 0   ;;  %s1191_s13 = smov 0  }
   0x2   :  { %s1193_s14 = smov 0   ;;  %s1195_s15 = smov 0  }
   0x3   :  { %s1197_s16 = smov 0   ;;  %s1199_s17 = smov 0  }
   0x4 LB: > { %s910_s18 = sadd.s32 4294967295, %s1163_s17   ;;  %s911_s19 = sadd.s32 4294967294, %s1163_s17   ;;  %s1163_s17 = sphi %s1199_s17, %s16_s17   ;;  %s1159_s16 = sphi %s1197_s16, %s1366_s16   ;;  %s1155_s15 = sphi %s1195_s15, %s1365_s15   ;;  %s1151_s14 = sphi %s1193_s14, %s1364_s14   ;;  %s1147_s13 = sphi %s1191_s13, %s1363_s13   ;;  %s1143_s12 = sphi %s1189_s12, %s1362_s12  }
   0x5   : > { %s28_s20 = sadd.s32 1, %s1159_s16  ;;  %s107_s21 = sadd.s32 1, %s1151_s14 }
   0x6   : > { %p30_p0 = scmp.ge.s32.totalorder %s28_s20, 2  ;;  %p117_p1 = scmp.ne.s32.totalorder %s1151_s14, %s1147_s13 }
   0x7   : > { %p118_p2 = scmp.eq.s32.totalorder %s910_s18, 1  ;;  %p123_p3 = scmp.ne.s32.totalorder %s1147_s13, %s1143_s12 }
   0x8   : > { %s1368_s20 = smov (%p30_p0, %s28_s20), 0  ;;  %p124_p5 = scmp.eq.s32.totalorder %s911_s19, 1 }
   0x9   : > { %p1229_p4 = por %p118_p2, %p117_p1  ;;  %s102_s23 = ssub.s32 %s1159_s16, %s1368_s20 }
   0xa   : > { %p914_p6 = scmp.ge.s32.totalorder %s1163_s17, 1  ;;  %p105_p7 = scmp.eq.s32.totalorder %s102_s23, 0 }
   0xb   : > { %p1236_p8 = por %p124_p5, %p123_p3  ;;  %p158_p9 = scmp.lt.s32.totalorder %s1163_s17, 3 }
   0xc   : > { %s1242_s25 = scalar_select %p105_p7, %s1151_s14, %s107_s21  }
   0xd   : > { %p159_p10 = pnand %p914_p6, %p158_p9 }
   0xe   : > { %p184_p11 = scmp.lt.s32.totalorder (!%p159_p10), %s1155_s15, 1  ;;  %v191_v0 = vld [vmem:[%s1357_s1] sm:$0xff] (!%p159_p10)  ;;  %vm220_vm0 = vcmask (!%p159_p10), 31744   ;;  %v192_v1 = vld [vmem:[%s1357_s1 + $0x8] sm:$0xff] (!%p159_p10)  ;;  %v193_v2 = vld [vmem:[%s1357_s1 + $0x10] sm:$0xff] (!%p159_p10)  ;;  %v1165_v12 = vmov (!%p159_p10), 0  }
   0xf   : > { %162 = sbr.rel (%p159_p10) target bundleno = 287 (0x11f), region = 32  ;;  %v222_v3 = vsel (!%p159_p10), %vm220_vm0, %v191_v0, 0  ;;  %v225_v4 = vsel (!%p159_p10), %vm220_vm0, %v192_v1, 0  ;;  %v228_v5 = vsel (!%p159_p10), %vm220_vm0, %v193_v2, 0  ;;  %v194_v6 = vld [vmem:[%s1357_s1 + $0x18] sm:$0xff] (!%p159_p10)  ;;  %v195_v7 = vld [vmem:[%s1358_s2] sm:$0xff] (!%p159_p10)  ;;  %1083 = vset.pattern.permute.xlu0 (!%p159_p10), %v1165_v12  ;;  %1084 = vset.pattern.permute.xlu1 (!%p159_p10), %v1165_v12 }
  0x10   : > { %v1261_v8 = vand.u32 (!%p159_p10), 4294901760, %v222_v3  ;;  %v1263_v9 = vand.u32 (!%p159_p10), 4294901760, %v225_v4  ;;  %v1265_v10 = vand.u32 (!%p159_p10), 4294901760, %v228_v5  ;;  %v231_v11 = vsel (!%p159_p10), %vm220_vm0, %v194_v6, 0  ;;  %v197_v13 = vld [vmem:[%s1358_s2 + $0x10] sm:$0xff] (!%p159_p10)  ;;  %202 = vperm.xlu0 (!%p159_p10), %1083, %v195_v7   ;;  %v196_v18 = vld [vmem:[%s1358_s2 + $0x8] sm:$0xff] (!%p159_p10) }
  0x11   : > { %v1270_v14 = vand.u32 (!%p159_p10), 4294901760, %v231_v11  ;;  %212 = vperm.xlu1 (!%p159_p10), %1084, %v197_v13   ;;  %vm233_vm1 = vcmask (!%p159_p10), 1043456   ;;  %v198_v19 = vld [vmem:[%s1358_s2 + $0x18] sm:$0xff] (!%p159_p10)  ;;  %s181_s30 = sand.u32 (!%p159_p10), 1, %s1147_s13   ;;  %s922_s7 = sshll.u32 (!%p159_p10), %s1155_s15, 9 }
  0x12   : > { %v304_v15 = vsub.f32 (!%p159_p10), %v222_v3, %v1261_v8  ;;  %v314_v16 = vsub.f32 (!%p159_p10), %v225_v4, %v1263_v9  ;;  %v324_v17 = vsub.f32 (!%p159_p10), %v228_v5, %v1265_v10  ;;  %s915_s4 = sshll.u32 (!%p159_p10), %s181_s30, 5  ;;  %s1306_s10 = scalar_lea.hbm (!%p159_p10), %s1359_s3, %s922_s7 }
  0x13   : > { %v334_v20 = vsub.f32 (!%p159_p10), %v231_v11, %v1270_v14  ;;  %s183_s5 = scalar_lea.vmem (!%p159_p10), [#allocation2], %s915_s4 }
  0x14   : > { %v305_v22 = vand.u32 (!%p159_p10), 4294901760, %v304_v15  ;;  %v315_v23 = vand.u32 (!%p159_p10), 4294901760, %v314_v16  ;;  %v325_v24 = vand.u32 (!%p159_p10), 4294901760, %v324_v17  ;;  %207 = vperm.xlu0 (!%p159_p10), %1083, %v196_v18   ;;  %s835_s6 = sshll.u32 (!%p159_p10), %s183_s5, 4  ;;  %s1301_s6 = int_to_ptr.vmem [resolvable:$true] %s835_s6 }
  0x15   : > { %v335_v26 = vand.u32 (!%p159_p10), 4294901760, %v334_v20  ;;  %217 = vperm.xlu1 (!%p159_p10), %1084, %v198_v19   ;;  %s1085_s11 = scalar_lea.vmem (!%p159_p10), %s1301_s6, 512 }
  0x16   : > { %s185_s9 = scalar_select %p184_p11, %s1155_s15, 1  ;;  %979 = vmatprep.mubr.f32.mxu0 %v305_v22  ;;  %v306_v28 = vsub.f32 %v304_v15, %v305_v22  ;;  %v316_v29 = vsub.f32 %v314_v16, %v315_v23  ;;  %v326_v30 = vsub.f32 %v324_v17, %v325_v24 }
  0x17   : > { %v336_v31 = vsub.f32 %v334_v20, %v335_v26  ;;  %s1310_s15 = scalar_lea.sflag [#allocation3], %s181_s30  ;;  %p1086_p12 = scmp.ne.s32.totalorder %s1301_s6, %s1085_s11 }
  0x18   : > { %s916_s18 = sshll.u32 %s185_s9, 2  ;;  %v307_v32 = vand.u32 4294901760, %v306_v28  ;;  %v317_v33 = vand.u32 4294901760, %v316_v29  ;;  %v327_v34 = vand.u32 4294901760, %v326_v30 }
  0x19   : > { %s190_s29 = scalar_lea.vmem %s1356_s0, %s916_s18  ;;  %v337_v37 = vand.u32 4294901760, %v336_v31  ;;  %p1087_p13 = pnand %p1086_p12, %p1229_p4 }
  0x1a   : > { %v199_v21 = vld [vmem:[%s190_s29] sm:$0xf]  ;;  %955 = vmatprep.mubr.f32.mxu1 %v307_v32  ;;  %s1166_s18 = smov [#allocation2]  }
  0x1b   : > { %v235_v25 = vsel %vm233_vm1, %v199_v21, 0  ;;  %p1088_p0 = pneg %p1087_p13  ;;  %s1089_s19 = sshll.u32 %s1166_s18, 4  ;;  %s1090_s19 = int_to_ptr.vmem [resolvable:$false] %s1089_s19 }
  0x1c   : > { %v238_v27 = vand.u32 4294901760, %v235_v25  ;;  %s1091_s21 = scalar_lea.vmem %s1090_s19, 1024  ;;  %p1092_p1 = scmp.lt.s32.totalorder %s1301_s6, %s1090_s19 }
  0x1d   : > { %p1093_p2 = scmp.lt.s32.totalorder %s1091_s21, %s1085_s11 }
  0x1e   : > { %977 = vmatprep.subr.mxu0 %v238_v27  ;;  %953 = vmatprep.subr.mxu1 %v238_v27  ;;  %v345_v35 = vsub.f32 %v235_v25, %v238_v27 }
  0x1f   : > { %978 = vmatpush3.msra.mxu0 %v238_v27  ;;  %954 = vmatpush3.msra.mxu1 %v238_v27  ;;  %p1094_p3 = por %p1093_p2, %p1092_p1 }
  0x20   : > { %980 = vmatmul.mubr.f32.vlgmr.msra.gmra.mrb[0].mxu0 %v315_v23  ;;  %v346_v36 = vand.u32 4294901760, %v345_v35  ;;  %956 = vmatmul.mubr.f32.vlgmr.msra.gmra.mrb[0].mxu1 %v317_v33 }
  0x21   : > { %982 = vmatprep.mubr.f32.mxu0 %v325_v24  ;;  %958 = vmatprep.mubr.f32.mxu1 %v327_v34  ;;  %p1095_p5 = pnand %p1094_p3, %p1088_p0 }
  0x22   : > { %v347_v38 = vsub.f32 %v345_v35, %v346_v36  ;;  %985 = vmatprep.subr.mxu0 %v346_v36 }
  0x23   : > { %986 = vmatpush3.msra.mxu0 %v346_v36 }
  0x24   : > { %983 = vmatmul.mubr.f32.gmra.mrb[2].mxu0 %v335_v26  ;;  %v348_v39 = vand.u32 4294901760, %v347_v38  ;;  %993 = vmatprep.subr.mxu0 %v238_v27 }
  0x25   : > { %959 = vmatmul.mubr.f32.gmra.mrb[2].mxu1 %v337_v37  ;;  %987 = vmatprep.mubr.f32.mxu0 %v1261_v8 }
  0x26   : > { %961 = vmatprep.subr.mxu1 %v348_v39  ;;  %963 = vmatprep.mubr.f32.mxu1 %v1261_v8 }
  0x27   : > { %962 = vmatpush3.msra.mxu1 %v348_v39 }
  0x28   : > { %988 = vmatmul.mubr.f32.vlgmr.msra.gmra.mrb[0].mxu0 %v1263_v9  ;;  %969 = vmatprep.subr.mxu1 %v345_v35 }
  0x29   : > { %964 = vmatmul.mubr.f32.vlgmr.msra.gmra.mrb[0].mxu1 %v1263_v9  ;;  %990 = vmatprep.mubr.f32.mxu0 %v1265_v10 }
  0x2a   : > { %966 = vmatprep.mubr.f32.mxu1 %v1265_v10  ;;  %970 = vmatpush3.msra.mxu1 %v345_v35 }
  0x2b   : > { %994 = vmatpush3.msra.mxu0 %v238_v27 }
  0x2c   : > { %991 = vmatmul.mubr.f32.gmra.mrb[2].mxu0 %v1270_v14 }
  0x2d   : > { %967 = vmatmul.mubr.f32.gmra.mrb[2].mxu1 %v1270_v14  ;;  %995 = vmatprep.mubr.f32.mxu0 %v1261_v8 }
  0x2e   : > { %971 = vmatprep.mubr.f32.mxu1 %v304_v15 }
  0x30   : > { %996 = vmatmul.mubr.f32.vlgmr.msra.gmra.mrb[0].mxu0 %v1263_v9 }
  0x31   : > { %972 = vmatmul.mubr.f32.vlgmr.msra.gmra.mrb[0].mxu1 %v314_v16  ;;  %998 = vmatprep.mubr.f32.mxu0 %v1265_v10 }
  0x32   : > { %974 = vmatprep.mubr.f32.mxu1 %v324_v17 }
  0x34   : > { %999 = vmatmul.mubr.f32.gmra.mrb[2].mxu0 %v1270_v14 }
  0x35   : > { %975 = vmatmul.mubr.f32.gmra.mrb[2].mxu1 %v334_v20 }
  0x8f   : > { %v203_v40 = vpop.permute.xlu0 %202 }
  0x90   : > { %v213_v41 = vpop.permute.xlu1 %212 }
  0x93   : > { %v208_v42 = vpop.permute.xlu0 %207 }
  0x94   : > { %v218_v51 = vpop.permute.xlu1 %217 }
 0x103   : > { %v997_v43 = vpop.f32.mrb[0].mxu0 }
 0x104   : > { %v973_v44 = vpop.f32.mrb[0].mxu1  ;;  %v790_v45 = vpop.f32.mrb[1].mxu0 }
 0x105   : > { %v1001_v46 = vadd.f32 %v973_v44, %v208_v42  ;;  %v507_v47 = vpop.f32.mrb[1].mxu1 }
 0x106   : > { %v1003_v48 = vadd.f32 %v507_v47, %v203_v40 }
 0x107   : > { %v1002_v49 = vadd.f32 %v1001_v46, %v997_v43  ;;  %v1000_v50 = vpop.f32.mrb[2].mxu0 }
 0x108   : > { %v1004_v52 = vadd.f32 %v1003_v48, %v790_v45  ;;  %v976_v53 = vpop.f32.mrb[2].mxu1  ;;  %v802_v54 = vpop.f32.mrb[3].mxu0 }
 0x109   : > { %v813_v55 = vmax.f32 %v1002_v49, 0.0  ;;  %v1005_v56 = vadd.f32 %v976_v53, %v218_v51  ;;  %v521_v57 = vpop.f32.mrb[3].mxu1 }
 0x10a   : > { %v812_v58 = vmax.f32 %v1004_v52, 0.0  ;;  %v1007_v59 = vadd.f32 %v521_v57, %v213_v41 }
 0x10b   : > { %817 = vst [vmem:[%s183_s5 + $0x8] sm:$0xff] %v813_v55  ;;  %v1006_v60 = vadd.f32 %v1005_v56, %v1000_v50 }
 0x10c   : > { %816 = vst [vmem:[%s183_s5] sm:$0xff] %v812_v58  ;;  %v1008_v61 = vadd.f32 %v1007_v59, %v802_v54 }
 0x10d   : > { %v815_v62 = vmax.f32 %v1006_v60, 0.0 }
 0x10e   : > { %v814_v63 = vmax.f32 %v1008_v61, 0.0 }
 0x10f   : > { %819 = vst [vmem:[%s183_s5 + $0x18] sm:$0xff] %v815_v62 }
 0x110   : > { %818 = vst [vmem:[%s183_s5 + $0x10] sm:$0xff] %v814_v63 }
 0x111   : > { %1098 = shalt.err (!%p1095_p5)
}
 0x112   : > { %s1099_s23 = scalar_lea.hbm %s1306_s10, 512  ;;  %s1103_s28 = scalar_lea.hbm %s1359_s3, 1024 }
 0x113   : > { %p1100_p6 = scmp.ne.s32.totalorder %s1306_s10, %s1099_s23  ;;  %p1104_p10 = scmp.lt.u32.totalorder %s1306_s10, %s1359_s3 }
 0x114   : > { %p1105_p11 = scmp.lt.u32.totalorder %s1103_s28, %s1099_s23  ;;  %p1107_p13 = scmp.lt.u32.totalorder %s1099_s23, %s1306_s10 }
 0x115   : > { %p1101_p7 = pnand %p1100_p6, %p1229_p4 }
 0x116   : > { %p1106_p12 = por %p1105_p11, %p1104_p10 }
 0x117   : > { %p1102_p9 = pneg %p1101_p7 }
 0x118   : > { %p1108_p0 = por %p1107_p13, %p1106_p12 }
 0x11a   : > { %p1109_p1 = pnand %p1108_p0, %p1102_p9 }
 0x11c   : > { %1112 = shalt.err (!%p1109_p1)
}
 0x11d   : > { %s1167_s4 = smov 128   ;;  %s1168_s5 = smov 8  }
 0x11e   : > { %1025 = dma.vmem_to_hbm [thread:$0]  (%p1229_p4), %s1301_s6, 512, %s1306_s10, %s1310_s15, %s1167_s4, %s1167_s4, %s1168_s5  }
 0x11f PF: > { %p1031_p2 = scmp.ge.s32.totalorder %s1163_s17, 2  ;;  %s850_s7 = sand.u32 1, %s1143_s12  }
 0x120   : > { %s851_s8 = scalar_lea.sflag [#allocation3], %s850_s7 }
 0x121   : > { %p1028_p3 = pnand %p1031_p2, %p1236_p8 }
 0x123   : > { %1138 = dma.done.wait (!%p1028_p3), %s851_s8, 512  }
 0x124   : > { %1140 = vsyncadd (!%p1028_p3), %s851_s8, 4294966784  ;;  %s16_s17 = sadd.s32 1, %s1163_s17   ;;  %s1362_s12 = smov %s1147_s13 }
 0x125   : > { %p13_p5 = scmp.ge.s32.totalorder %s16_s17, 4   ;;  %s1363_s13 = smov %s1151_s14 }
 0x126   : > { %s1364_s14 = smov %s1242_s25  ;;  %s1365_s15 = smov %s1159_s16 }
 0x127   : > { %s1366_s16 = smov %s1368_s20  ;;  %15 = sbr.rel (!%p13_p5) target bundleno = 4 (0x4), region = 67 }
 0x12e   :  { %856 = vsyncpa [#allocation3], 1 }
 0x12f   :  { %858 = vsyncpa [#allocation3 + $0x1], 1 }

</bundles_post_ra>
